<compile_context>
chip_gen: v7x
topology: tpu7x:2x2x1
jax: 0.10.0
libtpu: 0.0.40
codegen_flags: <defaults>
</compile_context>

<pallas_src>
import jax
import jax.numpy as jnp
import numpy as np
from jax import lax
from jax.experimental import pallas as pl
from jax.experimental.pallas import tpu as pltpu


def _round_up(x, m):
    return ((x + m - 1) // m) * m


def _tpu_defaults():
    """Return (physical VMEM bytes per core, preferred MXU M-rows target)."""
    try:
        vmem = int(pltpu.get_tpu_info().vmem_capacity_bytes)
        # v7x: 64 MiB VMEM / 2x256x256 MXU -> aim for ~256 rows;
        # v5e/v6e: 128 MiB VMEM / 128-wide MXU granularity -> ~128 rows.
        target_m = 256 if vmem <= 80 * 1024 * 1024 else 128
        return vmem, target_m
    except Exception:  # pragma: no cover - conservative fallback off-TPU / old jax
        return 64 * 1024 * 1024, 128


def _make_kernel(n_chunks, a_chunk):
    """Build the fused kernel.

    Refs:
      x_ref    : (Mb, 2*Lp)   bf16   rows = flattened (batch, C_out), cols = [xw0 | xw1]
      adjt_ref : (2*Lp, Ahp)  bf16   [adj_even^T ; adj_odd^T]    (grid-invariant)
      adje_ref : (Ahp, Lp)    bf16   adj[0::2]                   (grid-invariant)
      out_ref  : (Mb, Lp)     f32 (or bf16)
      acc_ref  : (Mb, Lp)     f32 scratch (chunked path only)
    """
    if n_chunks == 1:
        def kernel(x_ref, adjt_ref, adje_ref, out_ref):
            # mm1 + conv (channel mixing hoisted to wrapper): one MXU matmul, K = 2*Lp.
            z = jnp.dot(x_ref[...], adjt_ref[...],
                        preferred_element_type=jnp.float32)
            # mm2: z @ adj[::2] — natural orientation, f32 accumulation.
            out_ref[...] = jnp.dot(z.astype(jnp.bfloat16), adje_ref[...],
                                   preferred_element_type=jnp.float32
                                   ).astype(out_ref.dtype)
        return kernel

    def kernel(x_ref, adjt_ref, adje_ref, out_ref, acc_ref):
        acc_ref[...] = jnp.zeros_like(acc_ref)

        # Chunk the adjacency-row dimension so the (Mb, Ahp) intermediate stays in
        # vregs / small scratch instead of spilling for large adjacencies.  [#4]
        @pl.loop(0, n_chunks)
        def _(c):
            c0 = pl.multiple_of(c * a_chunk, 128)
            z = jnp.dot(x_ref[...], adjt_ref[:, pl.ds(c0, a_chunk)],
                        preferred_element_type=jnp.float32)
            acc_ref[...] += jnp.dot(z.astype(jnp.bfloat16),
                                    adje_ref[pl.ds(c0, a_chunk), :],
                                    preferred_element_type=jnp.float32)

        out_ref[...] = acc_ref[...].astype(out_ref.dtype)

    return kernel


def adjacency_conv_sparse(seq, adj, weight, *, batch_block=None,
                          out_dtype=jnp.float32):
    """Forward pass of AdjacencyConvSparse.

    seq    : (N, C_in, L) float
    adj    : (A, L) float, A even (dense 0/1 adjacency as used by SparseMM)
    weight : (C_out, C_in, 2) float -- Conv1d(k=2, s=2, bias=False) weight
    returns: (N, C_out, L) in out_dtype (float32 default; bf16 useful on v5e [#10])
    """
    N, C_in, L = seq.shape
    A, L2 = adj.shape
    assert L2 == L and A % 2 == 0, "adj must be (A, L) with A even"
    C_out, C_in2, K = weight.shape
    assert C_in2 == C_in and K == 2

    phys_vmem, target_m = _tpu_defaults()

    # ---- per-step batch block: ~target_m MXU rows, 16-aligned for bf16 [#5, #7] --
    if batch_block is None:
        B = max(1, target_m // max(C_out, 1))
    else:
        B = max(1, int(batch_block))
    B = max(1, min(B, N))
    while (B * C_out) % 16:
        B += 1

    num_blocks = -(-N // B)
    if num_blocks > 1 and num_blocks % 2:
        num_blocks += 1            # even block count -> both v7x TCs stay busy [#11]
    Np = num_blocks * B
    Mb = B * C_out

    # ---- TPU-friendly padded extents (zero padding => exact result) -------------
    Lp = _round_up(L, 128)                  # lane-dense loads / stores
    Ah = A // 2
    CHUNK = 512
    Ahp = _round_up(max(Ah, 1), 128)        # lane-aligned even/odd halves      [#3]
    if Ahp > CHUNK:
        Ahp = _round_up(Ahp, CHUNK)
        a_chunk = CHUNK
    else:
        a_chunk = Ahp
    n_chunks = Ahp // a_chunk

    # ---- wrapper-side operand prep (plain XLA glue / layout plumbing) -----------
    # Hoist the conv's channel mixing (commutes with the adjacency matmuls) so the
    # kernel only runs adjacency MXU matmuls with M = B*C_out (no kron B^2 waste).
    # Trade-off: input HBM bytes grow by 2*C_out/C_in vs. streaming raw seq.   [#6]
    xw = jnp.einsum('oik,nil->knol', weight.astype(jnp.float32),
                    seq.astype(jnp.float32))                    # (2, N, C_out, L)
    xw = jnp.pad(xw, ((0, 0), (0, Np - N), (0, 0), (0, Lp - L)))
    x_cat = jnp.concatenate(
        [xw[0].reshape(Np * C_out, Lp), xw[1].reshape(Np * C_out, Lp)],
        axis=1).astype(jnp.bfloat16)                            # (Np*C_out, 2*Lp)

    adj_f = adj.astype(jnp.float32)
    adj_e = jnp.pad(adj_f[0::2, :], ((0, Ahp - Ah), (0, Lp - L)))   # (Ahp, Lp)
    adj_o = jnp.pad(adj_f[1::2, :], ((0, Ahp - Ah), (0, Lp - L)))
    # Pre-transposed operand for mm1 -> no in-kernel transpose/relayout.        [#8]
    adj_t = jnp.concatenate([adj_e.T, adj_o.T], axis=0).astype(jnp.bfloat16)  # (2Lp, Ahp)
    adj_e = adj_e.astype(jnp.bfloat16)           # exact cast for a 0/1 adjacency [#4]

    # ---- VMEM budget: actual buffers + headroom, capped at 85% of physical [#2] --
    out_isz = np.dtype(out_dtype).itemsize
    need = (2 * Mb * (2 * Lp) * 2            # x block: double-buffered bf16
            + (2 * Lp) * Ahp * 2             # adj^T:   single-buffered (Buffered(1))
            + Ahp * Lp * 2                   # adj_even: single-buffered
            + 2 * Mb * Lp * out_isz          # out block: double-buffered
            + Mb * Lp * 4                    # f32 accumulator scratch (chunked path)
            + Mb * a_chunk * 6)              # z chunk (f32) + its bf16 copy
    vmem_limit = min(max(need + (8 << 20), 32 << 20), int(0.85 * phys_vmem))

    flops = 2 * (Np * C_out) * (2 * Lp) * Ahp + 2 * (Np * C_out) * Ahp * Lp
    bytes_accessed = (x_cat.size * 2 + adj_t.size * 2 + adj_e.size * 2
                      + Np * C_out * Lp * out_isz)

    kernel = _make_kernel(n_chunks, a_chunk)
    scratch_shapes = [] if n_chunks == 1 else [pltpu.VMEM((Mb, Lp), jnp.float32)]

    def _call(single_buffer_invariants):
        # Grid-invariant operands are never re-fetched -> one buffer is enough. [#1]
        pm = ({'pipeline_mode': pl.Buffered(1)}
              if single_buffer_invariants else {})
        grid_spec = pltpu.PrefetchScalarGridSpec(
            num_scalar_prefetch=0,
            grid=(num_blocks,),
            in_specs=[
                pl.BlockSpec((Mb, 2 * Lp), lambda g: (g, 0)),
                pl.BlockSpec((2 * Lp, Ahp), lambda g: (0, 0), **pm),
                pl.BlockSpec((Ahp, Lp), lambda g: (0, 0), **pm),
            ],
            out_specs=pl.BlockSpec((Mb, Lp), lambda g: (g, 0)),
            scratch_shapes=scratch_shapes,
        )
        return pl.pallas_call(
            kernel,
            out_shape=jax.ShapeDtypeStruct((Np * C_out, Lp), out_dtype),
            grid_spec=grid_spec,
            compiler_params=pltpu.CompilerParams(
                dimension_semantics=("parallel",),
                vmem_limit_bytes=vmem_limit),
            cost_estimate=pl.CostEstimate(flops=flops, transcendentals=0,
                                          bytes_accessed=bytes_accessed),
        )(x_cat, adj_t, adj_e)

    try:
        out_flat = _call(True)
    except Exception:
        # Conservative fallback for toolchains without pipeline_mode/Buffered(1).
        out_flat = _call(False)

    # TODO(synk): if (2*Lp)*Ahp bf16 cannot stay VMEM-resident on v7x (64 MiB/TC),
    # add an L-tile grid axis for the output and stream adj column tiles as well.
    out = out_flat.reshape(Np, C_out, Lp)
    return out[:N, :, :L]


def _reference(seq, adj, weight):
    # Pure-JAX reference mirroring the PyTorch forward exactly (f32 throughout).
    y = jnp.einsum('ncl,al->nca', seq, adj)                      # seq @ adj.T
    z = lax.conv_general_dilated(
        y, weight, window_strides=(2,), padding='VALID',
        dimension_numbers=('NCH', 'OIH', 'NCH'))                 # Conv1d k=2 s=2
    return jnp.einsum('nca,al->ncl', z, adj[::2, :])             # z @ adj[::2]


if __name__ == "__main__":
    key = jax.random.PRNGKey(0)
    k_s1, k_a1, k_w1, k_s2, k_a2, k_w2 = jax.random.split(key, 6)

    def make_inputs(k_s, k_a, k_w, N, C_in, C_out, L, A):
        seq = jax.random.normal(k_s, (N, C_in, L), dtype=jnp.float32)
        adj = (jax.random.uniform(k_a, (A, L)) < 0.25).astype(jnp.float32)
        bound = 1.0 / jnp.sqrt(jnp.float32(C_in * 2))            # PyTorch-style init
        weight = jax.random.uniform(k_w, (C_out, C_in, 2), dtype=jnp.float32,
                                    minval=-bound, maxval=bound)
        return seq, adj, weight

    # Case 1: small lane-friendly shapes; explicit batch_block=8 -> grid=(2,).
    seq, adj, weight = make_inputs(k_s1, k_a1, k_w1, 16, 4, 8, 128, 64)
    out = jax.block_until_ready(
        adjacency_conv_sparse(seq, adj, weight, batch_block=8))
    ref = _reference(seq, adj, weight)
    assert out.shape == ref.shape == (16, 8, 128)
    err = float(jnp.max(jnp.abs(out - ref)) / (jnp.max(jnp.abs(ref)) + 1e-6))
    assert err < 3e-2, err

    # Case 2: ragged N/L and a large adjacency -> exercises padding, the 16-aligned
    # batch block, and the chunked (Ahp > 512) in-kernel accumulation path.
    seq2, adj2, w2 = make_inputs(k_s2, k_a2, k_w2, 10, 3, 5, 200, 1100)
    out2 = jax.block_until_ready(adjacency_conv_sparse(seq2, adj2, w2))
    ref2 = _reference(seq2, adj2, w2)
    assert out2.shape == ref2.shape == (10, 5, 200)
    err2 = float(jnp.max(jnp.abs(out2 - ref2)) / (jnp.max(jnp.abs(ref2)) + 1e-6))
    assert err2 < 3e-2, err2

    print("KERNEL_OK")
</pallas_src>

<mosaic_0001>
module attributes {stable_mosaic.version = 11 : i64} {
  func.func @kernel(%arg0: i32, %arg1: memref<64x256xbf16, #tpu.memory_space<vmem>>, %arg2: memref<256x128xbf16, #tpu.memory_space<vmem>>, %arg3: memref<128x128xbf16, #tpu.memory_space<vmem>>, %arg4: memref<64x128xf32, #tpu.memory_space<vmem>>) attributes {dimension_semantics = [#tpu.dimension_semantics<parallel>], iteration_bounds = array<i64: 2>, scalar_prefetch = 0 : i64, scratch_operands = 0 : i64, tpu.core_type = #tpu.core_type<tc>, window_params = [{transform_indices = @transform_0, window_bounds = array<i64: 64, 256>}, {pipeline_mode = #tpu.pipeline_mode<synchronous>, transform_indices = @transform_1, window_bounds = array<i64: 256, 128>}, {pipeline_mode = #tpu.pipeline_mode<synchronous>, transform_indices = @transform_2, window_bounds = array<i64: 128, 128>}, {transform_indices = @transform_3, window_bounds = array<i64: 64, 128>}]} {
    %c0 = arith.constant 0 : index
    %c0_0 = arith.constant 0 : index
    %0 = vector.load %arg1[%c0, %c0_0] : memref<64x256xbf16, #tpu.memory_space<vmem>>, vector<64x256xbf16>
    %c0_1 = arith.constant 0 : index
    %c0_2 = arith.constant 0 : index
    %1 = vector.load %arg2[%c0_1, %c0_2] : memref<256x128xbf16, #tpu.memory_space<vmem>>, vector<256x128xbf16>
    %cst = arith.constant dense<0.000000e+00> : vector<64x128xf32>
    %2 = tpu.matmul %0, %1, %cst {dimension_numbers = #tpu.dot_dimension_numbers<[1], [0], [0], [1], [0, 0, 1, 1], [], []>} : vector<64x256xbf16>, vector<256x128xbf16>, vector<64x128xf32> -> vector<64x128xf32>
    %3 = arith.truncf %2 : vector<64x128xf32> to vector<64x128xbf16>
    %c0_3 = arith.constant 0 : index
    %c0_4 = arith.constant 0 : index
    %4 = vector.load %arg3[%c0_3, %c0_4] : memref<128x128xbf16, #tpu.memory_space<vmem>>, vector<128x128xbf16>
    %cst_5 = arith.constant dense<0.000000e+00> : vector<64x128xf32>
    %5 = tpu.matmul %3, %4, %cst_5 {dimension_numbers = #tpu.dot_dimension_numbers<[1], [0], [0], [1], [0, 0, 1, 1], [], []>} : vector<64x128xbf16>, vector<128x128xbf16>, vector<64x128xf32> -> vector<64x128xf32>
    %c0_6 = arith.constant 0 : index
    %c0_7 = arith.constant 0 : index
    %6 = vector.load %arg4[%c0_6, %c0_7] : memref<64x128xf32, #tpu.memory_space<vmem>>, vector<64x128xf32>
    tpu.vector_store %arg4[%c0_6, %c0_7], %5 {strides = array<i32>} : memref<64x128xf32, #tpu.memory_space<vmem>>, vector<64x128xf32>,
    return
  }
  func.func @transform_0(%arg0: i32) -> (i32, i32) {
    %c0_i32 = arith.constant 0 : i32
    %c0_i32_0 = arith.constant 0 : i32
    return %arg0, %c0_i32 : i32, i32
  }
  func.func @transform_1(%arg0: i32) -> (i32, i32) {
    %c0_i32 = arith.constant 0 : i32
    %c0_i32_0 = arith.constant 0 : i32
    %c0_i32_1 = arith.constant 0 : i32
    return %c0_i32, %c0_i32_0 : i32, i32
  }
  func.func @transform_2(%arg0: i32) -> (i32, i32) {
    %c0_i32 = arith.constant 0 : i32
    %c0_i32_0 = arith.constant 0 : i32
    %c0_i32_1 = arith.constant 0 : i32
    return %c0_i32, %c0_i32_0 : i32, i32
  }
  func.func @transform_3(%arg0: i32) -> (i32, i32) {
    %c0_i32 = arith.constant 0 : i32
    %c0_i32_0 = arith.constant 0 : i32
    return %arg0, %c0_i32 : i32, i32
  }
}

module attributes {stable_mosaic.version = 11 : i64} {
  func.func @kernel(%arg0: i32, %arg1: memref<64x256xbf16, #tpu.memory_space<vmem>>, %arg2: memref<256x128xbf16, #tpu.memory_space<vmem>>, %arg3: memref<128x128xbf16, #tpu.memory_space<vmem>>, %arg4: memref<64x128xf32, #tpu.memory_space<vmem>>) attributes {dimension_semantics = [#tpu.dimension_semantics<parallel>], iteration_bounds = array<i64: 2>, scalar_prefetch = 0 : i64, scratch_operands = 0 : i64, tpu.core_type = #tpu.core_type<tc>, window_params = [{transform_indices = @transform_0, window_bounds = array<i64: 64, 256>}, {pipeline_mode = #tpu.pipeline_mode<synchronous>, transform_indices = @transform_1, window_bounds = array<i64: 256, 128>}, {pipeline_mode = #tpu.pipeline_mode<synchronous>, transform_indices = @transform_2, window_bounds = array<i64: 128, 128>}, {transform_indices = @transform_3, window_bounds = array<i64: 64, 128>}]} {
    %c0 = arith.constant 0 : index
    %c0_0 = arith.constant 0 : index
    %0 = vector.load %arg1[%c0, %c0_0] : memref<64x256xbf16, #tpu.memory_space<vmem>>, vector<64x256xbf16>
    %c0_1 = arith.constant 0 : index
    %c0_2 = arith.constant 0 : index
    %1 = vector.load %arg2[%c0_1, %c0_2] : memref<256x128xbf16, #tpu.memory_space<vmem>>, vector<256x128xbf16>
    %cst = arith.constant dense<0.000000e+00> : vector<64x128xf32>
    %2 = tpu.matmul %0, %1, %cst {dimension_numbers = #tpu.dot_dimension_numbers<[1], [0], [0], [1], [0, 0, 1, 1], [], []>} : vector<64x256xbf16>, vector<256x128xbf16>, vector<64x128xf32> -> vector<64x128xf32>
    %3 = arith.truncf %2 : vector<64x128xf32> to vector<64x128xbf16>
    %c0_3 = arith.constant 0 : index
    %c0_4 = arith.constant 0 : index
    %4 = vector.load %arg3[%c0_3, %c0_4] : memref<128x128xbf16, #tpu.memory_space<vmem>>, vector<128x128xbf16>
    %cst_5 = arith.constant dense<0.000000e+00> : vector<64x128xf32>
    %5 = tpu.matmul %3, %4, %cst_5 {dimension_numbers = #tpu.dot_dimension_numbers<[1], [0], [0], [1], [0, 0, 1, 1], [], []>} : vector<64x128xbf16>, vector<128x128xbf16>, vector<64x128xf32> -> vector<64x128xf32>
    %c0_6 = arith.constant 0 : index
    %c0_7 = arith.constant 0 : index
    %6 = vector.load %arg4[%c0_6, %c0_7] : memref<64x128xf32, #tpu.memory_space<vmem>>, vector<64x128xf32>
    tpu.vector_store %arg4[%c0_6, %c0_7], %5 {strides = array<i32>} : memref<64x128xf32, #tpu.memory_space<vmem>>, vector<64x128xf32>,
    return
  }
  func.func @transform_0(%arg0: i32) -> (i32, i32) {
    %c0_i32 = arith.constant 0 : i32
    %c0_i32_0 = arith.constant 0 : i32
    return %arg0, %c0_i32 : i32, i32
  }
  func.func @transform_1(%arg0: i32) -> (i32, i32) {
    %c0_i32 = arith.constant 0 : i32
    %c0_i32_0 = arith.constant 0 : i32
    %c0_i32_1 = arith.constant 0 : i32
    return %c0_i32, %c0_i32_0 : i32, i32
  }
  func.func @transform_2(%arg0: i32) -> (i32, i32) {
    %c0_i32 = arith.constant 0 : i32
    %c0_i32_0 = arith.constant 0 : i32
    %c0_i32_1 = arith.constant 0 : i32
    return %c0_i32, %c0_i32_0 : i32, i32
  }
  func.func @transform_3(%arg0: i32) -> (i32, i32) {
    %c0_i32 = arith.constant 0 : i32
    %c0_i32_0 = arith.constant 0 : i32
    return %arg0, %c0_i32 : i32, i32
  }
}

</mosaic_0001>

<bundles_post_ra>
// kernel: tpu_custom_call.1
= control target key start
LH: loop header
LB: loop body
LE: loop exit
PB: predicated region body
PF: predicated region fallthrough
CT: control target
= control target key end

     0   :  { %8 = vsyncpa [#allocation3], 0  ;;  %s1385_s0 = inlined_call_operand.hbm [shape: bf16[128,256], index: 0, kind: input, shape index: {}]   ;;  %s1386_s1 = inlined_call_operand.hbm [shape: bf16[256,128], index: 1, kind: input, shape index: {}]   ;;  %s1387_s2 = inlined_call_operand.hbm [shape: bf16[128,128], index: 2, kind: input, shape index: {}]   ;;  %s1388_s3 = inlined_call_operand.hbm [shape: f32[128,128], index: 3, kind: output, shape index: {}]  }
   0x1   :  { %10 = vsyncpa [#allocation3 + $0x1], 0 }
   0x2   :  { %11 = vsyncpa [#allocation6], 0 }
   0x3   :  { %12 = vsyncpa [#allocation4], 0 }
   0x4   :  { %14 = vsyncpa [#allocation4 + $0x1], 0  ;;  %s1137_s12 = smov 0   ;;  %s1139_s13 = smov 0  }
   0x5   :  { %s1141_s14 = smov 0   ;;  %s1143_s15 = smov 0  }
   0x6 LB: > { %s1158_s16 = sadd.s32 4294967295, %s1105_s15   ;;  %s710_s17 = sadd.s32 4294967294, %s1105_s15   ;;  %s1105_s15 = sphi %s1143_s15, %s1408_s15   ;;  %s1101_s14 = sphi %s1141_s14, %s1407_s14   ;;  %s1097_s13 = sphi %s1139_s13, %s1406_s13   ;;  %s1093_s12 = sphi %s1137_s12, %s1405_s12  }
   0x7   : > { %p40_p0 = scmp.ne.s32.totalorder %s1097_s13, %s1093_s12  ;;  %p1389_p1 = scmp.eq.s32.totalorder %s1158_s16, 0 }
   0x8   : > { %p112_p3 = scmp.eq.s32.totalorder %s710_s17, 1  ;;  %p711_p5 = scmp.ge.s32.totalorder %s1105_s15, 1 }
   0x9   : > { %p1167_p4 = por %p1389_p1, %p40_p0  ;;  %p119_p7 = scmp.lt.s32.totalorder %s1105_s15, 3 }
   0xa   : > { %p1172_p6 = por %p112_p3, %p40_p0  ;;  %s1107_s21 = smov [#allocation5]  }
   0xb   : > { %s1392_s18 = scalar_select %p1167_p4, 1, 0 }
   0xc   : > { %s1393_s19 = scalar_select %p1172_p6, 1, 0 }
   0xd   : > { %p1177_p8 = pnand %p711_p5, %p119_p7  ;;  %s131_s22 = sshll.u32 %s1107_s21, 4  ;;  %s1181_s22 = int_to_ptr.vmem [resolvable:$true] %s131_s22 }
   0xe   : > { %s1108_s24 = smov [#allocation7]   ;;  %s949_s28 = scalar_lea.hbm %s1386_s1, 2048 }
   0xf   : > { %p852_p9 = pneg %p1177_p8  ;;  %s144_s25 = sshll.u32 %s1108_s24, 4  ;;  %s1192_s25 = int_to_ptr.vmem [resolvable:$true] %s144_s25 }
  0x10   : > { %p950_p12 = scmp.ne.s32.totalorder %s1386_s1, %s949_s28  ;;  %p956_p5 = scmp.lt.u32.totalorder %s949_s28, %s1386_s1 }
  0x11   : > { %p1188_p11 = pnand %p852_p9, %p1389_p1 }
  0x13   : > { %p951_p13 = pneg %p1188_p11 }
  0x15   : > { %p952_p0 = pnand %p951_p13, %p950_p12 }
  0x17   : > { %p953_p3 = pneg %p952_p0 }
  0x19   : > { %p958_p7 = pnand %p956_p5, %p953_p3 }
  0x1b   : > { %961 = shalt.err (!%p958_p7)
}
  0x1c   : > { %s962_s6 = scalar_lea.vmem %s1181_s22, 2048  ;;  %p970_p2 = scmp.lt.s32.totalorder %s1181_s22, %s1181_s22 }
  0x1d   : > { %p963_p9 = scmp.ne.s32.totalorder %s1181_s22, %s962_s6  ;;  %p971_p12 = scmp.lt.s32.totalorder %s962_s6, %s962_s6 }
  0x1f   : > { %p965_p10 = pnand %p963_p9, %p951_p13  ;;  %p972_p0 = por %p971_p12, %p970_p2 }
  0x21   : > { %p966_p1 = pneg %p965_p10 }
  0x23   : > { %p973_p6 = pnand %p972_p0, %p966_p1 }
  0x25   : > { %976 = shalt.err (!%p973_p6)
}
  0x26   : > { %s1109_s7 = smov 64   ;;  %s1110_s8 = smov 4  }
  0x27   : > { %855 = dma.hbm_to_vmem [thread:$0]  (!%p1188_p11), %s1386_s1, 2048, %s1181_s22, [#allocation6], %s1109_s7, %s1109_s7, %s1110_s8  }
  0x28   : > { %s977_s21 = scalar_lea.hbm %s1387_s2, 1024 }
  0x29   : > { %p978_p2 = scmp.ne.s32.totalorder %s1387_s2, %s977_s21  ;;  %p984_p10 = scmp.lt.u32.totalorder %s977_s21, %s1387_s2 }
  0x2b   : > { %p980_p1 = pnand %p978_p2, %p951_p13 }
  0x2d   : > { %p981_p6 = pneg %p980_p1 }
  0x2f   : > { %p986_p3 = pnand %p984_p10, %p981_p6 }
  0x31   : > { %989 = shalt.err (!%p986_p3)
}
  0x32   : > { %s990_s22 = scalar_lea.vmem %s1192_s25, 1024  ;;  %p998_p12 = scmp.lt.s32.totalorder %s1192_s25, %s1192_s25 }
  0x33   : > { %p991_p5 = scmp.ne.s32.totalorder %s1192_s25, %s990_s22  ;;  %p999_p0 = scmp.lt.s32.totalorder %s990_s22, %s990_s22 }
  0x35   : > { %p993_p7 = pnand %p991_p5, %p951_p13  ;;  %p1000_p2 = por %p999_p0, %p998_p12 }
  0x37   : > { %p994_p9 = pneg %p993_p7 }
  0x39   : > { %p1001_p1 = pnand %p1000_p2, %p994_p9 }
  0x3b   : > { %1004 = shalt.err (!%p1001_p1)
}
  0x3c   : > { %858 = dma.hbm_to_vmem [thread:$0]  (!%p1188_p11), %s1387_s2, 1024, %s1192_s25, [#allocation6], %s1109_s7, %s1109_s7, %s1110_s8  }
  0x3d   : > { %s1247_s4 = sadd.s32 1, %s1105_s15   ;;  %s27_s23 = sadd.s32 1, %s1101_s14 }
  0x3e   : > { %s24_s5 = ssub.s32 %s1105_s15, %s1247_s4  ;;  %p34_p13 = scmp.ne.s32.totalorder %s1101_s14, %s1097_s13 }
  0x3f   : > { %p25_p6 = scmp.eq.s32.totalorder %s24_s5, 0  ;;  %p35_p10 = scmp.eq.s32.totalorder %s1105_s15, 0 }
  0x40   : > { %p1396_p3 = scmp.eq.s32.totalorder %s1158_s16, 1  ;;  %p869_p7 = scmp.lt.s32.totalorder %s1105_s15, 2 }
  0x41   : > { %s1263_s9 = scalar_select %p25_p6, %s1101_s14, %s27_s23  }
  0x42   : > { %p1257_p5 = por %p1396_p3, %p34_p13  ;;  %p36_p9 = por %p35_p10, %p34_p13 }
  0x43   : > { %s158_s10 = sand.u32 1, %s1101_s14   ;;  %s762_s25 = sshll.u32 %s1105_s15, 10 }
  0x44   : > { %s1397_s6 = scalar_select %p1257_p5, 1, 0 }
  0x45   : > { %s715_s11 = sshll.u32 %s158_s10, 6  ;;  %s1270_s17 = scalar_lea.hbm %s1385_s0, %s762_s25 }
  0x46   : > { %s162_s21 = scalar_lea.vmem [#allocation2], %s715_s11  ;;  %p1274_p11 = pnand %p869_p7, %p36_p9 }
  0x47   : > { %s170_s24 = sshll.u32 %s162_s21, 4  ;;  %s1278_s27 = scalar_lea.sflag [#allocation3], %s158_s10  ;;  %s1272_s24 = int_to_ptr.vmem [resolvable:$true] %s170_s24 }
  0x48   : > { %s1005_s28 = scalar_lea.hbm %s1270_s17, 1024  ;;  %p1007_p0 = pneg %p1274_p11 }
  0x49   : > { %p1006_p12 = scmp.ne.s32.totalorder %s1270_s17, %s1005_s28  ;;  %s1010_s30 = scalar_lea.hbm %s1385_s0, 2048 }
  0x4a   : > { %p1011_p13 = scmp.lt.u32.totalorder %s1270_s17, %s1385_s0  ;;  %p1012_p6 = scmp.lt.u32.totalorder %s1010_s30, %s1005_s28 }
  0x4b   : > { %p1008_p2 = pnand %p1007_p0, %p1006_p12  ;;  %p1014_p3 = scmp.lt.u32.totalorder %s1005_s28, %s1270_s17 }
  0x4c   : > { %p1013_p10 = por %p1012_p6, %p1011_p13 }
  0x4d   : > { %p1009_p1 = pneg %p1008_p2 }
  0x4e   : > { %p1015_p7 = por %p1014_p3, %p1013_p10 }
  0x50   : > { %p1016_p9 = pnand %p1015_p7, %p1009_p1 }
  0x52   : > { %1019 = shalt.err (!%p1016_p9)
}
  0x53   : > { %s1020_s10 = scalar_lea.vmem %s1272_s24, 1024  ;;  %s1111_s11 = smov [#allocation2]  }
  0x54   : > { %p1021_p12 = scmp.ne.s32.totalorder %s1272_s24, %s1020_s10  ;;  %s1025_s25 = sshll.u32 %s1111_s11, 4  ;;  %s1026_s25 = int_to_ptr.vmem [resolvable:$false] %s1025_s25 }
  0x55   : > { %s1027_s7 = scalar_lea.vmem %s1026_s25, 2048  ;;  %p1028_p4 = scmp.lt.s32.totalorder %s1272_s24, %s1026_s25 }
  0x56   : > { %p1023_p2 = pnand %p1021_p12, %p1007_p0  ;;  %p1029_p13 = scmp.lt.s32.totalorder %s1027_s7, %s1020_s10 }
  0x58   : > { %p1024_p5 = pneg %p1023_p2  ;;  %p1030_p6 = por %p1029_p13, %p1028_p4 }
  0x5a   : > { %p1031_p10 = pnand %p1030_p6, %p1024_p5 }
  0x5c   : > { %1034 = shalt.err (!%p1031_p10)
}
  0x5d   : > { %s1112_s8 = smov 128   ;;  %s1113_s21 = smov 8  }
  0x5e   : > { %862 = dma.hbm_to_vmem [thread:$0]  (!%p1274_p11), %s1270_s17, 1024, %s1272_s24, %s1278_s27, %s1112_s8, %s1112_s8, %s1113_s21  }
  0x5f   : > { %182 = sbr.rel (%p1177_p8) target bundleno = 612 (0x264), region = 32  ;;  %s1309_s28 = sand.u32 (!%p1177_p8), 1, %s1097_s13  }
  0x60   : > { %s720_s22 = sshll.u32 (!%p1177_p8), %s1309_s28, 6  ;;  %s185_s29 = scalar_lea.sflag (!%p1177_p8), [#allocation3], %s1309_s28 }
  0x61   : > { %s1315_s30 = scalar_lea.vmem (!%p1177_p8), [#allocation2], %s720_s22  ;;  %p1399_p4 = scmp.ne.s32.totalorder (!%p1177_p8), %s1392_s18, 0 }
  0x66   : > { %1080 = dma.done.wait (%p1399_p4), %s185_s29, 1024  }
  0x67   : > { %1082 = vsyncadd (%p1399_p4), %s185_s29, 4294966272  ;;  %p1400_p5 = scmp.eq.s32.totalorder %s1158_s16, 0 }
  0x69   : > { %1084 = dma.done.wait (%p1400_p5), [#allocation6], 3072   ;;  %p1401_p8 = pmov %p1400_p5 }
  0x6a   : > { %v913_v0 = vld [vmem:[#allocation5 + $0x40] sm:$0xff]   ;;  %v915_v2 = vld [vmem:[#allocation5 + $0x48] sm:$0xff]   ;;  %v917_v4 = vld [vmem:[#allocation5 + $0x50] sm:$0xff]   ;;  %s218_s18 = scalar_lea.vmem [#allocation8], %s720_s22  ;;  %s763_s17 = sshll.u32 %s1158_s16, 10 }
  0x6b   : > { %1086 = vsyncadd (%p1401_p8), [#allocation6], 4294964224  ;;  %v914_v1 = vld [vmem:[#allocation5] sm:$0xff]   ;;  %764 = vmatprep.subr.bf16.mxu0 %v913_v0  ;;  %v916_v3 = vld [vmem:[#allocation5 + $0x8] sm:$0xff]   ;;  %s618_s20 = sshll.u32 %s218_s18, 4  ;;  %s1341_s27 = scalar_lea.hbm %s1388_s3, %s763_s17  ;;  %s1336_s20 = int_to_ptr.vmem [resolvable:$true] %s618_s20 }
  0x6c   : > { %765 = vmatpush3.bf16.msra.mxu0 %v914_v1  ;;  %v918_v5 = vld [vmem:[#allocation5 + $0x10] sm:$0xff]   ;;  %v919_v6 = vld [vmem:[#allocation5 + $0x58] sm:$0xff]   ;;  %v921_v8 = vld [vmem:[#allocation5 + $0x60] sm:$0xff]   ;;  %s605_s23 = scalar_lea.sflag [#allocation4], %s1309_s28  ;;  %s1035_s16 = scalar_lea.vmem %s1336_s20, 1024 }
  0x6d   : > { %766 = vmatprep.subr.bf16.mxu0 %v915_v2  ;;  %v920_v7 = vld [vmem:[#allocation5 + $0x18] sm:$0xff]   ;;  %v922_v9 = vld [vmem:[#allocation5 + $0x20] sm:$0xff]   ;;  %v923_v10 = vld [vmem:[#allocation5 + $0x68] sm:$0xff]   ;;  %p1036_p11 = scmp.ne.s32.totalorder %s1336_s20, %s1035_s16  ;;  %p1402_p0 = scmp.ne.s32.totalorder %s1397_s6, 0 }
  0x6e   : > { %v931_v11 = vld [vmem:[%s1315_s30 + $0x4] ss:$8 sps:$4 sm:$0xff]   ;;  %v925_v13 = vld [vmem:[#allocation5 + $0x70] sm:$0xff]   ;;  %v927_v17 = vld [vmem:[#allocation5 + $0x78] sm:$0xff]   ;;  %s1114_s5 = smov [#allocation8]  }
  0x6f   : > { %v924_v12 = vld [vmem:[#allocation5 + $0x28] sm:$0xff]   ;;  %430 = vmatprep.mubr.bf16.mxu0 %v931_v11  ;;  %v926_v14 = vld [vmem:[#allocation5 + $0x30] sm:$0xff]   ;;  %v941_v15 = vld [vmem:[#allocation7] sm:$0xff]   ;;  %p1037_p1 = pnand %p1036_p11, %p1402_p0  ;;  %s1039_s10 = sshll.u32 %s1114_s5, 4  ;;  %s1040_s10 = int_to_ptr.vmem [resolvable:$false] %s1039_s10 }
  0x70   : > { %767 = vmatpush3.bf16.msra.mxu0 %v916_v3  ;;  %v942_v16 = vld [vmem:[#allocation7 + $0x8] sm:$0xff]   ;;  %816 = vmatprep.subr.bf16.mxu1 %v941_v15  ;;  %v928_v18 = vld [vmem:[#allocation5 + $0x38] sm:$0xff]   ;;  %v943_v19 = vld [vmem:[#allocation7 + $0x10] sm:$0xff]   ;;  %s1041_s11 = scalar_lea.vmem %s1040_s10, 2048  ;;  %p1042_p7 = scmp.lt.s32.totalorder %s1336_s20, %s1040_s10 }
  0x71   : > { %768 = vmatprep.subr.bf16.mxu0 %v917_v4  ;;  %817 = vmatpush3.bf16.msra.mxu1 %v941_v15  ;;  %v929_v20 = vld [vmem:[%s1315_s30] ss:$8 sps:$4 sm:$0xff]   ;;  %v944_v21 = vld [vmem:[#allocation7 + $0x18] sm:$0xff]   ;;  %v935_v24 = vld [vmem:[%s1315_s30 + $0x24] ss:$8 sps:$4 sm:$0xff]   ;;  %p1038_p3 = pneg %p1037_p1  ;;  %p1043_p9 = scmp.lt.s32.totalorder %s1041_s11, %s1035_s16 }
  0x72   : > { %818 = vmatprep.subr.bf16.mxu1 %v942_v16  ;;  %v932_v22 = vld [vmem:[%s1315_s30 + $0x14] ss:$8 sps:$4 sm:$0xff]   ;;  %v934_v23 = vld [vmem:[%s1315_s30 + $0x10] ss:$8 sps:$4 sm:$0xff]   ;;  %v937_v25 = vld [vmem:[%s1315_s30 + $0x20] ss:$8 sps:$4 sm:$0xff]  }
  0x73   : > { %v938_v26 = vld [vmem:[%s1315_s30 + $0x34] ss:$8 sps:$4 sm:$0xff]   ;;  %v940_v27 = vld [vmem:[%s1315_s30 + $0x30] ss:$8 sps:$4 sm:$0xff]   ;;  %v945_v28 = vld [vmem:[#allocation7 + $0x20] sm:$0xff]   ;;  %p1044_p12 = por %p1043_p9, %p1042_p7 }
  0x74   : > { %769 = vmatpush3.bf16.msra.mxu0 %v918_v5  ;;  %v946_v29 = vld [vmem:[#allocation7 + $0x28] sm:$0xff]   ;;  %v947_v30 = vld [vmem:[#allocation7 + $0x30] sm:$0xff]   ;;  %v948_v31 = vld [vmem:[#allocation7 + $0x38] sm:$0xff]  }
  0x75   : > { %770 = vmatprep.subr.bf16.mxu0 %v919_v6  ;;  %819 = vmatpush3.bf16.msra.mxu1 %v942_v16  ;;  %p1045_p2 = pnand %p1044_p12, %p1038_p3 }
  0x76   : > { %820 = vmatprep.subr.bf16.mxu1 %v943_v19 }
  0x78   : > { %771 = vmatpush3.bf16.msra.mxu0 %v920_v7 }
  0x79   : > { %772 = vmatprep.subr.bf16.mxu0 %v921_v8  ;;  %821 = vmatpush3.bf16.msra.mxu1 %v943_v19 }
  0x7a   : > { %822 = vmatprep.subr.bf16.mxu1 %v944_v21 }
  0x7c   : > { %773 = vmatpush3.bf16.msra.mxu0 %v922_v9 }
  0x7d   : > { %774 = vmatprep.subr.bf16.mxu0 %v923_v10  ;;  %823 = vmatpush3.bf16.msra.mxu1 %v944_v21 }
  0x7e   : > { %824 = vmatprep.subr.bf16.mxu1 %v945_v28 }
  0x80   : > { %775 = vmatpush3.bf16.msra.mxu0 %v924_v12 }
  0x81   : > { %776 = vmatprep.subr.bf16.mxu0 %v925_v13  ;;  %825 = vmatpush3.bf16.msra.mxu1 %v945_v28 }
  0x82   : > { %826 = vmatprep.subr.bf16.mxu1 %v946_v29 }
  0x84   : > { %777 = vmatpush3.bf16.msra.mxu0 %v926_v14 }
  0x85   : > { %778 = vmatprep.subr.bf16.mxu0 %v927_v17  ;;  %827 = vmatpush3.bf16.msra.mxu1 %v946_v29 }
  0x86   : > { %828 = vmatprep.subr.bf16.mxu1 %v947_v30 }
  0x88   : > { %779 = vmatpush3.bf16.msra.mxu0 %v928_v18 }
  0x89   : > { %829 = vmatpush3.bf16.msra.mxu1 %v947_v30 }
  0x8a   : > { %830 = vmatprep.subr.bf16.mxu1 %v948_v31 }
  0x8b   : > { %431 = vmatmul.mubr.bf16.vlgmr.msra.gmra.mrb[0].mxu0 %v929_v20 }
  0x8c   : > { %438 = vmatprep.mubr.bf16.mxu0 %v932_v22 }
  0x8d   : > { %831 = vmatpush3.bf16.msra.mxu1 %v948_v31 }
  0x93   : > { %439 = vmatmul.mubr.bf16.gmra.mrb[4].mxu0 %v934_v23 }
  0x94   : > { %446 = vmatprep.mubr.bf16.mxu0 %v935_v24 }
  0x9b   : > { %447 = vmatmul.mubr.bf16.gmra.mrb[8].mxu0 %v937_v25 }
  0x9c   : > { %454 = vmatprep.mubr.bf16.mxu0 %v938_v26 }
  0xa3   : > { %455 = vmatmul.mubr.bf16.gmra.mrb[12].mxu0 %v940_v27 }
 0x15e   : > { %v780_v32 = vpop.f32.mrb[0].mxu0 }
 0x15f   : > { %v781_v33 = vpop.f32.mrb[1].mxu0 }
 0x160   : > { %v782_v34 = vadd.f32 %v781_v33, %v780_v32  ;;  %v783_v35 = vpop.f32.mrb[2].mxu0 }
 0x161   : > { %v784_v36 = vpop.f32.mrb[3].mxu0 }
 0x162   : > { %v785_v37 = vadd.f32 %v784_v36, %v783_v35 }
 0x164   : > { %v463_v38 = vpack.c.bf16 %v785_v37, %v782_v34 }
 0x166   : > { %v786_v39 = vpop.f32.mrb[4].mxu0  ;;  %832 = vmatprep.mubr.bf16.mxu1 %v463_v38 }
 0x167   : > { %v787_v40 = vpop.f32.mrb[5].mxu0 }
 0x168   : > { %v788_v41 = vadd.f32 %v787_v40, %v786_v39  ;;  %v789_v42 = vpop.f32.mrb[6].mxu0 }
 0x169   : > { %v790_v43 = vpop.f32.mrb[7].mxu0 }
 0x16a   : > { %v791_v44 = vadd.f32 %v790_v43, %v789_v42 }
 0x16c   : > { %v464_v45 = vpack.c.bf16 %v791_v44, %v788_v41 }
 0x16e   : > { %v792_v46 = vpop.f32.mrb[8].mxu0  ;;  %833 = vmatmul.mubr.bf16.vlgmr.msra.gmra.mrb[0].mxu1 %v464_v45 }
 0x16f   : > { %v793_v47 = vpop.f32.mrb[9].mxu0 }
 0x170   : > { %v794_v48 = vadd.f32 %v793_v47, %v792_v46  ;;  %v795_v49 = vpop.f32.mrb[10].mxu0 }
 0x171   : > { %v796_v50 = vpop.f32.mrb[11].mxu0 }
 0x172   : > { %v797_v51 = vadd.f32 %v796_v50, %v795_v49 }
 0x174   : > { %v465_v52 = vpack.c.bf16 %v797_v51, %v794_v48 }
 0x176   : > { %v798_v53 = vpop.f32.mrb[12].mxu0  ;;  %836 = vmatprep.mubr.bf16.mxu1 %v465_v52 }
 0x177   : > { %v799_v54 = vpop.f32.mrb[13].mxu0 }
 0x178   : > { %v800_v55 = vadd.f32 %v799_v54, %v798_v53  ;;  %v801_v56 = vpop.f32.mrb[14].mxu0 }
 0x179   : > { %v802_v57 = vpop.f32.mrb[15].mxu0 }
 0x17a   : > { %v803_v58 = vadd.f32 %v802_v57, %v801_v56 }
 0x17c   : > { %v466_v59 = vpack.c.bf16 %v803_v58, %v800_v55 }
 0x17e   : > { %837 = vmatmul.mubr.bf16.gmra.mrb[4].mxu1 %v466_v59 }
 0x241   : > { %v834_v60 = vpop.f32.mrb[0].mxu1 }
 0x242   : > { %598 = vst [vmem:[%s218_s18 + $0x10] sm:$0xff] %v834_v60  ;;  %v565_v61 = vpop.f32.mrb[1].mxu1 }
 0x243   : > { %596 = vst [vmem:[%s218_s18] sm:$0xff] %v565_v61  ;;  %v835_v62 = vpop.f32.mrb[2].mxu1 }
 0x244   : > { %599 = vst [vmem:[%s218_s18 + $0x18] sm:$0xff] %v835_v62  ;;  %v568_v63 = vpop.f32.mrb[3].mxu1 }
 0x245   : > { %597 = vst [vmem:[%s218_s18 + $0x8] sm:$0xff] %v568_v63 }
 0x251   : > { %v838_v0 = vpop.f32.mrb[4].mxu1 }
 0x252   : > { %602 = vst [vmem:[%s218_s18 + $0x30] sm:$0xff] %v838_v0  ;;  %v581_v1 = vpop.f32.mrb[5].mxu1 }
 0x253   : > { %600 = vst [vmem:[%s218_s18 + $0x20] sm:$0xff] %v581_v1  ;;  %v839_v2 = vpop.f32.mrb[6].mxu1 }
 0x254   : > { %603 = vst [vmem:[%s218_s18 + $0x38] sm:$0xff] %v839_v2  ;;  %v584_v3 = vpop.f32.mrb[7].mxu1 }
 0x255   : > { %601 = vst [vmem:[%s218_s18 + $0x28] sm:$0xff] %v584_v3 }
 0x256   : > { %1048 = shalt.err (!%p1045_p2)
}
 0x257   : > { %s1049_s25 = scalar_lea.hbm %s1341_s27, 1024  ;;  %s1053_s21 = scalar_lea.hbm %s1388_s3, 2048 }
 0x258   : > { %p1050_p13 = scmp.ne.s32.totalorder %s1341_s27, %s1049_s25  ;;  %p1054_p4 = scmp.lt.u32.totalorder %s1341_s27, %s1388_s3 }
 0x259   : > { %p1055_p5 = scmp.lt.u32.totalorder %s1053_s21, %s1049_s25  ;;  %p1057_p11 = scmp.lt.u32.totalorder %s1049_s25, %s1341_s27 }
 0x25a   : > { %p1051_p6 = pnand %p1050_p13, %p1402_p0 }
 0x25b   : > { %p1056_p8 = por %p1055_p5, %p1054_p4 }
 0x25c   : > { %p1052_p10 = pneg %p1051_p6 }
 0x25d   : > { %p1058_p1 = por %p1057_p11, %p1056_p8 }
 0x25f   : > { %p1059_p3 = pnand %p1058_p1, %p1052_p10 }
 0x261   : > { %1062 = shalt.err (!%p1059_p3)
}
 0x262   : > { %s1115_s30 = smov 128   ;;  %s1116_s18 = smov 8  }
 0x263   : > { %850 = dma.vmem_to_hbm [thread:$0]  (%p1402_p0), %s1336_s20, 1024, %s1341_s27, %s605_s23, %s1115_s30, %s1115_s30, %s1116_s18  }
 0x264 PF: > { %s633_s17 = sand.u32 1, %s1093_s12   ;;  %p1403_p7 = scmp.ne.s32.totalorder %s1393_s19, 0 }
 0x265   : > { %p1404_p9 = scmp.ge.s32.totalorder %s1105_s15, 2  ;;  %s634_s24 = scalar_lea.sflag [#allocation4], %s633_s17 }
 0x267   : > { %p864_p12 = pnand %p1404_p9, %p1403_p7 }
 0x269   : > { %1088 = dma.done.wait (!%p864_p12), %s634_s24, 1024  }
 0x26a   : > { %1090 = vsyncadd (!%p864_p12), %s634_s24, 4294966272  ;;  %p17_p2 = scmp.ge.s32.totalorder %s1247_s4, 4   ;;  %s1405_s12 = smov %s1097_s13 }
 0x26b   : > { %s1406_s13 = smov %s1101_s14  ;;  %s1407_s14 = smov %s1263_s9 }
 0x26c   : > { %s1408_s15 = smov %s1247_s4  ;;  %19 = sbr.rel (!%p17_p2) target bundleno = 6 (0x6), region = 85 }
 0x273   :  { %639 = vsyncpa [#allocation3], 1 }
 0x274   :  { %641 = vsyncpa [#allocation3 + $0x1], 1 }
 0x275   :  { %642 = vsyncpa [#allocation6], 1 }
 0x276   :  { %643 = vsyncpa [#allocation4], 1 }
 0x277   :  { %645 = vsyncpa [#allocation4 + $0x1], 1 }

// kernel: tpu_custom_call.1
= control target key start
LH: loop header
LB: loop body
LE: loop exit
PB: predicated region body
PF: predicated region fallthrough
CT: control target
= control target key end

     0   :  { %8 = vsyncpa [#allocation3], 0  ;;  %s1385_s0 = inlined_call_operand.hbm [shape: bf16[128,256], index: 0, kind: input, shape index: {}]   ;;  %s1386_s1 = inlined_call_operand.hbm [shape: bf16[256,128], index: 1, kind: input, shape index: {}]   ;;  %s1387_s2 = inlined_call_operand.hbm [shape: bf16[128,128], index: 2, kind: input, shape index: {}]   ;;  %s1388_s3 = inlined_call_operand.hbm [shape: f32[128,128], index: 3, kind: output, shape index: {}]  }
   0x1   :  { %10 = vsyncpa [#allocation3 + $0x1], 0 }
   0x2   :  { %11 = vsyncpa [#allocation6], 0 }
   0x3   :  { %12 = vsyncpa [#allocation4], 0 }
   0x4   :  { %14 = vsyncpa [#allocation4 + $0x1], 0  ;;  %s1137_s12 = smov 0   ;;  %s1139_s13 = smov 0  }
   0x5   :  { %s1141_s14 = smov 0   ;;  %s1143_s15 = smov 0  }
   0x6 LB: > { %s1158_s16 = sadd.s32 4294967295, %s1105_s15   ;;  %s710_s17 = sadd.s32 4294967294, %s1105_s15   ;;  %s1105_s15 = sphi %s1143_s15, %s1408_s15   ;;  %s1101_s14 = sphi %s1141_s14, %s1407_s14   ;;  %s1097_s13 = sphi %s1139_s13, %s1406_s13   ;;  %s1093_s12 = sphi %s1137_s12, %s1405_s12  }
   0x7   : > { %p40_p0 = scmp.ne.s32.totalorder %s1097_s13, %s1093_s12  ;;  %p1389_p1 = scmp.eq.s32.totalorder %s1158_s16, 0 }
   0x8   : > { %p112_p3 = scmp.eq.s32.totalorder %s710_s17, 1  ;;  %p711_p5 = scmp.ge.s32.totalorder %s1105_s15, 1 }
   0x9   : > { %p1167_p4 = por %p1389_p1, %p40_p0  ;;  %p119_p7 = scmp.lt.s32.totalorder %s1105_s15, 3 }
   0xa   : > { %p1172_p6 = por %p112_p3, %p40_p0  ;;  %s1107_s21 = smov [#allocation5]  }
   0xb   : > { %s1392_s18 = scalar_select %p1167_p4, 1, 0 }
   0xc   : > { %s1393_s19 = scalar_select %p1172_p6, 1, 0 }
   0xd   : > { %p1177_p8 = pnand %p711_p5, %p119_p7  ;;  %s131_s22 = sshll.u32 %s1107_s21, 4  ;;  %s1181_s22 = int_to_ptr.vmem [resolvable:$true] %s131_s22 }
   0xe   : > { %s1108_s24 = smov [#allocation7]   ;;  %s949_s28 = scalar_lea.hbm %s1386_s1, 2048 }
   0xf   : > { %p852_p9 = pneg %p1177_p8  ;;  %s144_s25 = sshll.u32 %s1108_s24, 4  ;;  %s1192_s25 = int_to_ptr.vmem [resolvable:$true] %s144_s25 }
  0x10   : > { %p950_p12 = scmp.ne.s32.totalorder %s1386_s1, %s949_s28  ;;  %p956_p5 = scmp.lt.u32.totalorder %s949_s28, %s1386_s1 }
  0x11   : > { %p1188_p11 = pnand %p852_p9, %p1389_p1 }
  0x13   : > { %p951_p13 = pneg %p1188_p11 }
  0x15   : > { %p952_p0 = pnand %p951_p13, %p950_p12 }
  0x17   : > { %p953_p3 = pneg %p952_p0 }
  0x19   : > { %p958_p7 = pnand %p956_p5, %p953_p3 }
  0x1b   : > { %961 = shalt.err (!%p958_p7)
}
  0x1c   : > { %s962_s6 = scalar_lea.vmem %s1181_s22, 2048  ;;  %p970_p2 = scmp.lt.s32.totalorder %s1181_s22, %s1181_s22 }
  0x1d   : > { %p963_p9 = scmp.ne.s32.totalorder %s1181_s22, %s962_s6  ;;  %p971_p12 = scmp.lt.s32.totalorder %s962_s6, %s962_s6 }
  0x1f   : > { %p965_p10 = pnand %p963_p9, %p951_p13  ;;  %p972_p0 = por %p971_p12, %p970_p2 }
  0x21   : > { %p966_p1 = pneg %p965_p10 }
  0x23   : > { %p973_p6 = pnand %p972_p0, %p966_p1 }
  0x25   : > { %976 = shalt.err (!%p973_p6)
}
  0x26   : > { %s1109_s7 = smov 64   ;;  %s1110_s8 = smov 4  }
  0x27   : > { %855 = dma.hbm_to_vmem [thread:$0]  (!%p1188_p11), %s1386_s1, 2048, %s1181_s22, [#allocation6], %s1109_s7, %s1109_s7, %s1110_s8  }
  0x28   : > { %s977_s21 = scalar_lea.hbm %s1387_s2, 1024 }
  0x29   : > { %p978_p2 = scmp.ne.s32.totalorder %s1387_s2, %s977_s21  ;;  %p984_p10 = scmp.lt.u32.totalorder %s977_s21, %s1387_s2 }
  0x2b   : > { %p980_p1 = pnand %p978_p2, %p951_p13 }
  0x2d   : > { %p981_p6 = pneg %p980_p1 }
  0x2f   : > { %p986_p3 = pnand %p984_p10, %p981_p6 }
  0x31   : > { %989 = shalt.err (!%p986_p3)
}
  0x32   : > { %s990_s22 = scalar_lea.vmem %s1192_s25, 1024  ;;  %p998_p12 = scmp.lt.s32.totalorder %s1192_s25, %s1192_s25 }
  0x33   : > { %p991_p5 = scmp.ne.s32.totalorder %s1192_s25, %s990_s22  ;;  %p999_p0 = scmp.lt.s32.totalorder %s990_s22, %s990_s22 }
  0x35   : > { %p993_p7 = pnand %p991_p5, %p951_p13  ;;  %p1000_p2 = por %p999_p0, %p998_p12 }
  0x37   : > { %p994_p9 = pneg %p993_p7 }
  0x39   : > { %p1001_p1 = pnand %p1000_p2, %p994_p9 }
  0x3b   : > { %1004 = shalt.err (!%p1001_p1)
}
  0x3c   : > { %858 = dma.hbm_to_vmem [thread:$0]  (!%p1188_p11), %s1387_s2, 1024, %s1192_s25, [#allocation6], %s1109_s7, %s1109_s7, %s1110_s8  }
  0x3d   : > { %s1247_s4 = sadd.s32 1, %s1105_s15   ;;  %s27_s23 = sadd.s32 1, %s1101_s14 }
  0x3e   : > { %s24_s5 = ssub.s32 %s1105_s15, %s1247_s4  ;;  %p34_p13 = scmp.ne.s32.totalorder %s1101_s14, %s1097_s13 }
  0x3f   : > { %p25_p6 = scmp.eq.s32.totalorder %s24_s5, 0  ;;  %p35_p10 = scmp.eq.s32.totalorder %s1105_s15, 0 }
  0x40   : > { %p1396_p3 = scmp.eq.s32.totalorder %s1158_s16, 1  ;;  %p869_p7 = scmp.lt.s32.totalorder %s1105_s15, 2 }
  0x41   : > { %s1263_s9 = scalar_select %p25_p6, %s1101_s14, %s27_s23  }
  0x42   : > { %p1257_p5 = por %p1396_p3, %p34_p13  ;;  %p36_p9 = por %p35_p10, %p34_p13 }
  0x43   : > { %s158_s10 = sand.u32 1, %s1101_s14   ;;  %s762_s25 = sshll.u32 %s1105_s15, 10 }
  0x44   : > { %s1397_s6 = scalar_select %p1257_p5, 1, 0 }
  0x45   : > { %s715_s11 = sshll.u32 %s158_s10, 6  ;;  %s1270_s17 = scalar_lea.hbm %s1385_s0, %s762_s25 }
  0x46   : > { %s162_s21 = scalar_lea.vmem [#allocation2], %s715_s11  ;;  %p1274_p11 = pnand %p869_p7, %p36_p9 }
  0x47   : > { %s170_s24 = sshll.u32 %s162_s21, 4  ;;  %s1278_s27 = scalar_lea.sflag [#allocation3], %s158_s10  ;;  %s1272_s24 = int_to_ptr.vmem [resolvable:$true] %s170_s24 }
  0x48   : > { %s1005_s28 = scalar_lea.hbm %s1270_s17, 1024  ;;  %p1007_p0 = pneg %p1274_p11 }
  0x49   : > { %p1006_p12 = scmp.ne.s32.totalorder %s1270_s17, %s1005_s28  ;;  %s1010_s30 = scalar_lea.hbm %s1385_s0, 2048 }
  0x4a   : > { %p1011_p13 = scmp.lt.u32.totalorder %s1270_s17, %s1385_s0  ;;  %p1012_p6 = scmp.lt.u32.totalorder %s1010_s30, %s1005_s28 }
  0x4b   : > { %p1008_p2 = pnand %p1007_p0, %p1006_p12  ;;  %p1014_p3 = scmp.lt.u32.totalorder %s1005_s28, %s1270_s17 }
  0x4c   : > { %p1013_p10 = por %p1012_p6, %p1011_p13 }
  0x4d   : > { %p1009_p1 = pneg %p1008_p2 }
  0x4e   : > { %p1015_p7 = por %p1014_p3, %p1013_p10 }
  0x50   : > { %p1016_p9 = pnand %p1015_p7, %p1009_p1 }
  0x52   : > { %1019 = shalt.err (!%p1016_p9)
}
  0x53   : > { %s1020_s10 = scalar_lea.vmem %s1272_s24, 1024  ;;  %s1111_s11 = smov [#allocation2]  }
  0x54   : > { %p1021_p12 = scmp.ne.s32.totalorder %s1272_s24, %s1020_s10  ;;  %s1025_s25 = sshll.u32 %s1111_s11, 4  ;;  %s1026_s25 = int_to_ptr.vmem [resolvable:$false] %s1025_s25 }
  0x55   : > { %s1027_s7 = scalar_lea.vmem %s1026_s25, 2048  ;;  %p1028_p4 = scmp.lt.s32.totalorder %s1272_s24, %s1026_s25 }
  0x56   : > { %p1023_p2 = pnand %p1021_p12, %p1007_p0  ;;  %p1029_p13 = scmp.lt.s32.totalorder %s1027_s7, %s1020_s10 }
  0x58   : > { %p1024_p5 = pneg %p1023_p2  ;;  %p1030_p6 = por %p1029_p13, %p1028_p4 }
  0x5a   : > { %p1031_p10 = pnand %p1030_p6, %p1024_p5 }
  0x5c   : > { %1034 = shalt.err (!%p1031_p10)
}
  0x5d   : > { %s1112_s8 = smov 128   ;;  %s1113_s21 = smov 8  }
  0x5e   : > { %862 = dma.hbm_to_vmem [thread:$0]  (!%p1274_p11), %s1270_s17, 1024, %s1272_s24, %s1278_s27, %s1112_s8, %s1112_s8, %s1113_s21  }
  0x5f   : > { %182 = sbr.rel (%p1177_p8) target bundleno = 612 (0x264), region = 32  ;;  %s1309_s28 = sand.u32 (!%p1177_p8), 1, %s1097_s13  }
  0x60   : > { %s720_s22 = sshll.u32 (!%p1177_p8), %s1309_s28, 6  ;;  %s185_s29 = scalar_lea.sflag (!%p1177_p8), [#allocation3], %s1309_s28 }
  0x61   : > { %s1315_s30 = scalar_lea.vmem (!%p1177_p8), [#allocation2], %s720_s22  ;;  %p1399_p4 = scmp.ne.s32.totalorder (!%p1177_p8), %s1392_s18, 0 }
  0x66   : > { %1080 = dma.done.wait (%p1399_p4), %s185_s29, 1024  }
  0x67   : > { %1082 = vsyncadd (%p1399_p4), %s185_s29, 4294966272  ;;  %p1400_p5 = scmp.eq.s32.totalorder %s1158_s16, 0 }
  0x69   : > { %1084 = dma.done.wait (%p1400_p5), [#allocation6], 3072   ;;  %p1401_p8 = pmov %p1400_p5 }
  0x6a   : > { %v913_v0 = vld [vmem:[#allocation5 + $0x40] sm:$0xff]   ;;  %v915_v2 = vld [vmem:[#allocation5 + $0x48] sm:$0xff]   ;;  %v917_v4 = vld [vmem:[#allocation5 + $0x50] sm:$0xff]   ;;  %s218_s18 = scalar_lea.vmem [#allocation8], %s720_s22  ;;  %s763_s17 = sshll.u32 %s1158_s16, 10 }
  0x6b   : > { %1086 = vsyncadd (%p1401_p8), [#allocation6], 4294964224  ;;  %v914_v1 = vld [vmem:[#allocation5] sm:$0xff]   ;;  %764 = vmatprep.subr.bf16.mxu0 %v913_v0  ;;  %v916_v3 = vld [vmem:[#allocation5 + $0x8] sm:$0xff]   ;;  %s618_s20 = sshll.u32 %s218_s18, 4  ;;  %s1341_s27 = scalar_lea.hbm %s1388_s3, %s763_s17  ;;  %s1336_s20 = int_to_ptr.vmem [resolvable:$true] %s618_s20 }
  0x6c   : > { %765 = vmatpush3.bf16.msra.mxu0 %v914_v1  ;;  %v918_v5 = vld [vmem:[#allocation5 + $0x10] sm:$0xff]   ;;  %v919_v6 = vld [vmem:[#allocation5 + $0x58] sm:$0xff]   ;;  %v921_v8 = vld [vmem:[#allocation5 + $0x60] sm:$0xff]   ;;  %s605_s23 = scalar_lea.sflag [#allocation4], %s1309_s28  ;;  %s1035_s16 = scalar_lea.vmem %s1336_s20, 1024 }
  0x6d   : > { %766 = vmatprep.subr.bf16.mxu0 %v915_v2  ;;  %v920_v7 = vld [vmem:[#allocation5 + $0x18] sm:$0xff]   ;;  %v922_v9 = vld [vmem:[#allocation5 + $0x20] sm:$0xff]   ;;  %v923_v10 = vld [vmem:[#allocation5 + $0x68] sm:$0xff]   ;;  %p1036_p11 = scmp.ne.s32.totalorder %s1336_s20, %s1035_s16  ;;  %p1402_p0 = scmp.ne.s32.totalorder %s1397_s6, 0 }
  0x6e   : > { %v931_v11 = vld [vmem:[%s1315_s30 + $0x4] ss:$8 sps:$4 sm:$0xff]   ;;  %v925_v13 = vld [vmem:[#allocation5 + $0x70] sm:$0xff]   ;;  %v927_v17 = vld [vmem:[#allocation5 + $0x78] sm:$0xff]   ;;  %s1114_s5 = smov [#allocation8]  }
  0x6f   : > { %v924_v12 = vld [vmem:[#allocation5 + $0x28] sm:$0xff]   ;;  %430 = vmatprep.mubr.bf16.mxu0 %v931_v11  ;;  %v926_v14 = vld [vmem:[#allocation5 + $0x30] sm:$0xff]   ;;  %v941_v15 = vld [vmem:[#allocation7] sm:$0xff]   ;;  %p1037_p1 = pnand %p1036_p11, %p1402_p0  ;;  %s1039_s10 = sshll.u32 %s1114_s5, 4  ;;  %s1040_s10 = int_to_ptr.vmem [resolvable:$false] %s1039_s10 }
  0x70   : > { %767 = vmatpush3.bf16.msra.mxu0 %v916_v3  ;;  %v942_v16 = vld [vmem:[#allocation7 + $0x8] sm:$0xff]   ;;  %816 = vmatprep.subr.bf16.mxu1 %v941_v15  ;;  %v928_v18 = vld [vmem:[#allocation5 + $0x38] sm:$0xff]   ;;  %v943_v19 = vld [vmem:[#allocation7 + $0x10] sm:$0xff]   ;;  %s1041_s11 = scalar_lea.vmem %s1040_s10, 2048  ;;  %p1042_p7 = scmp.lt.s32.totalorder %s1336_s20, %s1040_s10 }
  0x71   : > { %768 = vmatprep.subr.bf16.mxu0 %v917_v4  ;;  %817 = vmatpush3.bf16.msra.mxu1 %v941_v15  ;;  %v929_v20 = vld [vmem:[%s1315_s30] ss:$8 sps:$4 sm:$0xff]   ;;  %v944_v21 = vld [vmem:[#allocation7 + $0x18] sm:$0xff]   ;;  %v935_v24 = vld [vmem:[%s1315_s30 + $0x24] ss:$8 sps:$4 sm:$0xff]   ;;  %p1038_p3 = pneg %p1037_p1  ;;  %p1043_p9 = scmp.lt.s32.totalorder %s1041_s11, %s1035_s16 }
  0x72   : > { %818 = vmatprep.subr.bf16.mxu1 %v942_v16  ;;  %v932_v22 = vld [vmem:[%s1315_s30 + $0x14] ss:$8 sps:$4 sm:$0xff]   ;;  %v934_v23 = vld [vmem:[%s1315_s30 + $0x10] ss:$8 sps:$4 sm:$0xff]   ;;  %v937_v25 = vld [vmem:[%s1315_s30 + $0x20] ss:$8 sps:$4 sm:$0xff]  }
  0x73   : > { %v938_v26 = vld [vmem:[%s1315_s30 + $0x34] ss:$8 sps:$4 sm:$0xff]   ;;  %v940_v27 = vld [vmem:[%s1315_s30 + $0x30] ss:$8 sps:$4 sm:$0xff]   ;;  %v945_v28 = vld [vmem:[#allocation7 + $0x20] sm:$0xff]   ;;  %p1044_p12 = por %p1043_p9, %p1042_p7 }
  0x74   : > { %769 = vmatpush3.bf16.msra.mxu0 %v918_v5  ;;  %v946_v29 = vld [vmem:[#allocation7 + $0x28] sm:$0xff]   ;;  %v947_v30 = vld [vmem:[#allocation7 + $0x30] sm:$0xff]   ;;  %v948_v31 = vld [vmem:[#allocation7 + $0x38] sm:$0xff]  }
  0x75   : > { %770 = vmatprep.subr.bf16.mxu0 %v919_v6  ;;  %819 = vmatpush3.bf16.msra.mxu1 %v942_v16  ;;  %p1045_p2 = pnand %p1044_p12, %p1038_p3 }
  0x76   : > { %820 = vmatprep.subr.bf16.mxu1 %v943_v19 }
  0x78   : > { %771 = vmatpush3.bf16.msra.mxu0 %v920_v7 }
  0x79   : > { %772 = vmatprep.subr.bf16.mxu0 %v921_v8  ;;  %821 = vmatpush3.bf16.msra.mxu1 %v943_v19 }
  0x7a   : > { %822 = vmatprep.subr.bf16.mxu1 %v944_v21 }
  0x7c   : > { %773 = vmatpush3.bf16.msra.mxu0 %v922_v9 }
  0x7d   : > { %774 = vmatprep.subr.bf16.mxu0 %v923_v10  ;;  %823 = vmatpush3.bf16.msra.mxu1 %v944_v21 }
  0x7e   : > { %824 = vmatprep.subr.bf16.mxu1 %v945_v28 }
  0x80   : > { %775 = vmatpush3.bf16.msra.mxu0 %v924_v12 }
  0x81   : > { %776 = vmatprep.subr.bf16.mxu0 %v925_v13  ;;  %825 = vmatpush3.bf16.msra.mxu1 %v945_v28 }
  0x82   : > { %826 = vmatprep.subr.bf16.mxu1 %v946_v29 }
  0x84   : > { %777 = vmatpush3.bf16.msra.mxu0 %v926_v14 }
  0x85   : > { %778 = vmatprep.subr.bf16.mxu0 %v927_v17  ;;  %827 = vmatpush3.bf16.msra.mxu1 %v946_v29 }
  0x86   : > { %828 = vmatprep.subr.bf16.mxu1 %v947_v30 }
  0x88   : > { %779 = vmatpush3.bf16.msra.mxu0 %v928_v18 }
  0x89   : > { %829 = vmatpush3.bf16.msra.mxu1 %v947_v30 }
  0x8a   : > { %830 = vmatprep.subr.bf16.mxu1 %v948_v31 }
  0x8b   : > { %431 = vmatmul.mubr.bf16.vlgmr.msra.gmra.mrb[0].mxu0 %v929_v20 }
  0x8c   : > { %438 = vmatprep.mubr.bf16.mxu0 %v932_v22 }
  0x8d   : > { %831 = vmatpush3.bf16.msra.mxu1 %v948_v31 }
  0x93   : > { %439 = vmatmul.mubr.bf16.gmra.mrb[4].mxu0 %v934_v23 }
  0x94   : > { %446 = vmatprep.mubr.bf16.mxu0 %v935_v24 }
  0x9b   : > { %447 = vmatmul.mubr.bf16.gmra.mrb[8].mxu0 %v937_v25 }
  0x9c   : > { %454 = vmatprep.mubr.bf16.mxu0 %v938_v26 }
  0xa3   : > { %455 = vmatmul.mubr.bf16.gmra.mrb[12].mxu0 %v940_v27 }
 0x15e   : > { %v780_v32 = vpop.f32.mrb[0].mxu0 }
 0x15f   : > { %v781_v33 = vpop.f32.mrb[1].mxu0 }
 0x160   : > { %v782_v34 = vadd.f32 %v781_v33, %v780_v32  ;;  %v783_v35 = vpop.f32.mrb[2].mxu0 }
 0x161   : > { %v784_v36 = vpop.f32.mrb[3].mxu0 }
 0x162   : > { %v785_v37 = vadd.f32 %v784_v36, %v783_v35 }
 0x164   : > { %v463_v38 = vpack.c.bf16 %v785_v37, %v782_v34 }
 0x166   : > { %v786_v39 = vpop.f32.mrb[4].mxu0  ;;  %832 = vmatprep.mubr.bf16.mxu1 %v463_v38 }
 0x167   : > { %v787_v40 = vpop.f32.mrb[5].mxu0 }
 0x168   : > { %v788_v41 = vadd.f32 %v787_v40, %v786_v39  ;;  %v789_v42 = vpop.f32.mrb[6].mxu0 }
 0x169   : > { %v790_v43 = vpop.f32.mrb[7].mxu0 }
 0x16a   : > { %v791_v44 = vadd.f32 %v790_v43, %v789_v42 }
 0x16c   : > { %v464_v45 = vpack.c.bf16 %v791_v44, %v788_v41 }
 0x16e   : > { %v792_v46 = vpop.f32.mrb[8].mxu0  ;;  %833 = vmatmul.mubr.bf16.vlgmr.msra.gmra.mrb[0].mxu1 %v464_v45 }
 0x16f   : > { %v793_v47 = vpop.f32.mrb[9].mxu0 }
 0x170   : > { %v794_v48 = vadd.f32 %v793_v47, %v792_v46  ;;  %v795_v49 = vpop.f32.mrb[10].mxu0 }
 0x171   : > { %v796_v50 = vpop.f32.mrb[11].mxu0 }
 0x172   : > { %v797_v51 = vadd.f32 %v796_v50, %v795_v49 }
 0x174   : > { %v465_v52 = vpack.c.bf16 %v797_v51, %v794_v48 }
 0x176   : > { %v798_v53 = vpop.f32.mrb[12].mxu0  ;;  %836 = vmatprep.mubr.bf16.mxu1 %v465_v52 }
 0x177   : > { %v799_v54 = vpop.f32.mrb[13].mxu0 }
 0x178   : > { %v800_v55 = vadd.f32 %v799_v54, %v798_v53  ;;  %v801_v56 = vpop.f32.mrb[14].mxu0 }
 0x179   : > { %v802_v57 = vpop.f32.mrb[15].mxu0 }
 0x17a   : > { %v803_v58 = vadd.f32 %v802_v57, %v801_v56 }
 0x17c   : > { %v466_v59 = vpack.c.bf16 %v803_v58, %v800_v55 }
 0x17e   : > { %837 = vmatmul.mubr.bf16.gmra.mrb[4].mxu1 %v466_v59 }
 0x241   : > { %v834_v60 = vpop.f32.mrb[0].mxu1 }
 0x242   : > { %598 = vst [vmem:[%s218_s18 + $0x10] sm:$0xff] %v834_v60  ;;  %v565_v61 = vpop.f32.mrb[1].mxu1 }
 0x243   : > { %596 = vst [vmem:[%s218_s18] sm:$0xff] %v565_v61  ;;  %v835_v62 = vpop.f32.mrb[2].mxu1 }
 0x244   : > { %599 = vst [vmem:[%s218_s18 + $0x18] sm:$0xff] %v835_v62  ;;  %v568_v63 = vpop.f32.mrb[3].mxu1 }
 0x245   : > { %597 = vst [vmem:[%s218_s18 + $0x8] sm:$0xff] %v568_v63 }
 0x251   : > { %v838_v0 = vpop.f32.mrb[4].mxu1 }
 0x252   : > { %602 = vst [vmem:[%s218_s18 + $0x30] sm:$0xff] %v838_v0  ;;  %v581_v1 = vpop.f32.mrb[5].mxu1 }
 0x253   : > { %600 = vst [vmem:[%s218_s18 + $0x20] sm:$0xff] %v581_v1  ;;  %v839_v2 = vpop.f32.mrb[6].mxu1 }
 0x254   : > { %603 = vst [vmem:[%s218_s18 + $0x38] sm:$0xff] %v839_v2  ;;  %v584_v3 = vpop.f32.mrb[7].mxu1 }
 0x255   : > { %601 = vst [vmem:[%s218_s18 + $0x28] sm:$0xff] %v584_v3 }
 0x256   : > { %1048 = shalt.err (!%p1045_p2)
}
 0x257   : > { %s1049_s25 = scalar_lea.hbm %s1341_s27, 1024  ;;  %s1053_s21 = scalar_lea.hbm %s1388_s3, 2048 }
 0x258   : > { %p1050_p13 = scmp.ne.s32.totalorder %s1341_s27, %s1049_s25  ;;  %p1054_p4 = scmp.lt.u32.totalorder %s1341_s27, %s1388_s3 }
 0x259   : > { %p1055_p5 = scmp.lt.u32.totalorder %s1053_s21, %s1049_s25  ;;  %p1057_p11 = scmp.lt.u32.totalorder %s1049_s25, %s1341_s27 }
 0x25a   : > { %p1051_p6 = pnand %p1050_p13, %p1402_p0 }
 0x25b   : > { %p1056_p8 = por %p1055_p5, %p1054_p4 }
 0x25c   : > { %p1052_p10 = pneg %p1051_p6 }
 0x25d   : > { %p1058_p1 = por %p1057_p11, %p1056_p8 }
 0x25f   : > { %p1059_p3 = pnand %p1058_p1, %p1052_p10 }
 0x261   : > { %1062 = shalt.err (!%p1059_p3)
}
 0x262   : > { %s1115_s30 = smov 128   ;;  %s1116_s18 = smov 8  }
 0x263   : > { %850 = dma.vmem_to_hbm [thread:$0]  (%p1402_p0), %s1336_s20, 1024, %s1341_s27, %s605_s23, %s1115_s30, %s1115_s30, %s1116_s18  }
 0x264 PF: > { %s633_s17 = sand.u32 1, %s1093_s12   ;;  %p1403_p7 = scmp.ne.s32.totalorder %s1393_s19, 0 }
 0x265   : > { %p1404_p9 = scmp.ge.s32.totalorder %s1105_s15, 2  ;;  %s634_s24 = scalar_lea.sflag [#allocation4], %s633_s17 }
 0x267   : > { %p864_p12 = pnand %p1404_p9, %p1403_p7 }
 0x269   : > { %1088 = dma.done.wait (!%p864_p12), %s634_s24, 1024  }
 0x26a   : > { %1090 = vsyncadd (!%p864_p12), %s634_s24, 4294966272  ;;  %p17_p2 = scmp.ge.s32.totalorder %s1247_s4, 4   ;;  %s1405_s12 = smov %s1097_s13 }
 0x26b   : > { %s1406_s13 = smov %s1101_s14  ;;  %s1407_s14 = smov %s1263_s9 }
 0x26c   : > { %s1408_s15 = smov %s1247_s4  ;;  %19 = sbr.rel (!%p17_p2) target bundleno = 6 (0x6), region = 85 }
 0x273   :  { %639 = vsyncpa [#allocation3], 1 }
 0x274   :  { %641 = vsyncpa [#allocation3 + $0x1], 1 }
 0x275   :  { %642 = vsyncpa [#allocation6], 1 }
 0x276   :  { %643 = vsyncpa [#allocation4], 1 }
 0x277   :  { %645 = vsyncpa [#allocation4 + $0x1], 1 }

</bundles_post_ra>
